<compile_context>
chip_gen: v7x
topology: tpu7x:2x2x1
jax: 0.10.0
libtpu: 0.0.40
codegen_flags: <defaults>
</compile_context>

<pallas_src>
import numpy as np

import jax
import jax.numpy as jnp
from jax import lax
from jax.experimental import pallas as pl
from jax.experimental.pallas import tpu as pltpu


def _round_up(x, m):
    return ((x + m - 1) // m) * m


def _cdiv(a, b):
    return (a + b - 1) // b


_LANE = 128           # OC padded to a multiple of this (lane-dense output)
_SUBLANE = 8          # OW padded to a multiple of this (sublane-aligned)
_TARGET_TILE_M = 512  # target matmul rows (TOH * OWp) per grid step


# ----------------------------------------------------------------------------
# Pallas kernel: direct conv for one (batch, output-row-tile) grid point.
# ----------------------------------------------------------------------------
def _make_conv_kernel(k, s, Hph, TOH, OWp, C, OCp):
    TM = TOH * OWp

    def kernel(x_ref, w_ref, b_ref, o_ref):
        # x_ref: (1, s*s*Hph, Wph, C)  phase-split padded image (one batch elem,
        #                              resident across all row-tiles)
        # w_ref: (k*k, C, OCp)         per-tap weight slices (lane-dense OCp)
        # b_ref: (1, OCp)              f32 bias (zero-padded)
        # o_ref: (1, 1, TM, OCp)       one lane-dense output row-tile
        row_base = pl.program_id(1) * TOH

        # Bias folded into the accumulator init.
        acc = jnp.broadcast_to(b_ref[...], (TM, OCp)).astype(jnp.float32)

        # k*k shifted matmuls; taps are a static Python loop (unrolled).
        for kh in range(k):
            for kw in range(k):
                phase = (kh % s) * s + (kw % s)      # static phase id
                r0 = row_base + (phase * Hph + kh // s)
                c0 = kw // s                          # static column offset
                slab = x_ref[0, pl.ds(r0, TOH), pl.ds(c0, OWp), :]  # (TOH, OWp, C)
                acc = acc + jnp.dot(
                    slab.reshape(TM, C),
                    w_ref[kh * k + kw],
                    preferred_element_type=jnp.float32,
                )

        o_ref[0, 0, :, :] = acc.astype(o_ref.dtype)

    return kernel


# ----------------------------------------------------------------------------
# Module-equivalent wrapper
# ----------------------------------------------------------------------------
class ConvPallas:
    """JAX/Pallas equivalent of the PyTorch `Conv` module."""

    def __init__(self, in_channels, out_channels, kernel_size, stride,
                 padding=0, upsample=False, *, key, compute_dtype=jnp.float32):
        self.upsample = upsample
        self.stride = 1 if upsample else stride
        self.padding = padding
        self.kernel_size = kernel_size
        self.reflect_pad = kernel_size // 2
        self.in_channels = in_channels
        self.out_channels = out_channels
        self.compute_dtype = compute_dtype

        kw_, kb_ = jax.random.split(key)
        fan_in = in_channels * kernel_size * kernel_size
        bound = 1.0 / (fan_in ** 0.5)  # torch Conv2d default init range
        self.weight = jax.random.uniform(
            kw_, (out_channels, in_channels, kernel_size, kernel_size),
            minval=-bound, maxval=bound, dtype=jnp.float32)
        self.bias = jax.random.uniform(
            kb_, (out_channels,), minval=-bound, maxval=bound, dtype=jnp.float32)

        # Pre-pack weights ONCE: (OC, C, kh, kw) -> (k*k, C, OCp), lane-dense OC.
        k = kernel_size
        self.OCp = _round_up(out_channels, _LANE)
        w_taps = jnp.transpose(self.weight, (2, 3, 1, 0)).reshape(
            k * k, in_channels, out_channels)
        self.w_taps = (jnp.zeros((k * k, in_channels, self.OCp), compute_dtype)
                       .at[:, :, :out_channels]
                       .set(w_taps.astype(compute_dtype)))
        self.b_pad = (jnp.zeros((1, self.OCp), jnp.float32)
                      .at[0, :out_channels].set(self.bias))

    def __call__(self, x):
        # x: [N, C, H, W] float32
        N, C, H, W = x.shape
        k, s = self.kernel_size, self.stride
        rp, zp = self.reflect_pad, self.padding
        OC, OCp = self.out_channels, self.OCp

        # ---- fused nearest-2x upsample + reflection pad: one gather through
        #      static index tables (replaces repeat + pad copies).
        def src_indices(size):
            up = size * 2 if self.upsample else size
            pos = np.arange(up + 2 * rp) - rp
            pos = np.where(pos < 0, -pos, pos)                 # reflect low edge
            pos = np.where(pos >= up, 2 * up - 2 - pos, pos)   # reflect high edge
            if self.upsample:
                pos = pos // 2                                 # nearest-2x source
            return jnp.asarray(pos, dtype=jnp.int32), up + 2 * rp

        h_idx, Hr = src_indices(H)
        w_idx, Wr = src_indices(W)
        xg = x[:, :, h_idx[:, None], w_idx[None, :]]           # (N, C, Hr, Wr)

        if zp > 0:  # Conv2d's own zero padding (rare; default 0)
            xg = jnp.pad(xg, ((0, 0), (0, 0), (zp, zp), (zp, zp)))
            Hr, Wr = Hr + 2 * zp, Wr + 2 * zp

        OH = (Hr - k) // s + 1
        OW = (Wr - k) // s + 1

        # ---- tiling (lane/sublane aligned)
        OWp = _round_up(OW, _SUBLANE)
        TOH = max(1, min(OH, _TARGET_TILE_M // OWp))
        T = _cdiv(OH, TOH)
        OHp = T * TOH
        TM = TOH * OWp

        # ---- space-to-depth phase split: stride-s conv -> contiguous slices.
        Hph = max(_cdiv(Hr, s), OHp + (k - 1) // s)
        Wph = max(_cdiv(Wr, s), OWp + (k - 1) // s)
        xh = jnp.transpose(xg, (0, 2, 3, 1)).astype(self.compute_dtype)   # NHWC
        xh = jnp.pad(xh, ((0, 0), (0, s * Hph - Hr), (0, s * Wph - Wr), (0, 0)))
        xph = (xh.reshape(N, Hph, s, Wph, s, C)
                 .transpose(0, 2, 4, 1, 3, 5)
                 .reshape(N, s * s * Hph, Wph, C))

        kernel = _make_conv_kernel(k, s, Hph, TOH, OWp, C, OCp)
        out = pl.pallas_call(
            kernel,
            out_shape=jax.ShapeDtypeStruct((N, T, TM, OCp), jnp.float32),
            grid_spec=pltpu.PrefetchScalarGridSpec(
                num_scalar_prefetch=0,
                grid=(N, T),
                in_specs=[
                    # whole phase-image per batch element; index ignores t so it
                    # stays VMEM-resident across all row-tiles of that image.
                    pl.BlockSpec((1, s * s * Hph, Wph, C),
                                 lambda n, t: (n, 0, 0, 0)),
                    pl.BlockSpec((k * k, C, OCp), lambda n, t: (0, 0, 0)),
                    pl.BlockSpec((1, OCp), lambda n, t: (0, 0)),
                ],
                out_specs=pl.BlockSpec((1, 1, TM, OCp),
                                       lambda n, t: (n, t, 0, 0)),
            ),
            compiler_params=pltpu.CompilerParams(
                dimension_semantics=("parallel", "parallel")),
        )(xph, self.w_taps, self.b_pad)

        # (N, T, TOH*OWp, OCp) -> (N, OHp, OWp, OCp) -> strip padding -> NCHW
        out = out.reshape(N, OHp, OWp, OCp)[:, :OH, :OW, :OC]
        return jnp.transpose(out, (0, 3, 1, 2))


# ----------------------------------------------------------------------------
# Demo / self-check
# ----------------------------------------------------------------------------
def _reference_conv(module: ConvPallas, x):
    """Pure-JAX reference (lax conv) for correctness checking."""
    if module.upsample:
        x = jnp.repeat(jnp.repeat(x, 2, axis=2), 2, axis=3)
    rp = module.reflect_pad
    if rp > 0:
        x = jnp.pad(x, ((0, 0), (0, 0), (rp, rp), (rp, rp)), mode="reflect")
    if module.padding > 0:
        zp = module.padding
        x = jnp.pad(x, ((0, 0), (0, 0), (zp, zp), (zp, zp)))
    y = lax.conv_general_dilated(
        x, module.weight, window_strides=(module.stride, module.stride),
        padding="VALID", dimension_numbers=("NCHW", "OIHW", "NCHW"))
    return y + module.bias.reshape(1, -1, 1, 1)


if __name__ == "__main__":
    key = jax.random.PRNGKey(0)
    kx, km1, km2 = jax.random.split(key, 3)

    # Small, module-consistent shapes: batch=2, in_ch=4, spatial=16x16.
    x = jax.random.normal(kx, (2, 4, 16, 16), dtype=jnp.float32)

    # Config 1: downsampling conv (kernel=3, stride=2, no upsample).
    conv_down = ConvPallas(4, 8, kernel_size=3, stride=2, upsample=False, key=km1)
    y_down = jax.block_until_ready(conv_down(x))
    ref_down = _reference_conv(conv_down, x)
    assert y_down.shape == (2, 8, 8, 8), y_down.shape
    assert jnp.allclose(y_down, ref_down, atol=1e-4, rtol=1e-4)

    # Config 2: upsampling conv (kernel=3, upsample=True forces stride=1).
    conv_up = ConvPallas(4, 8, kernel_size=3, stride=2, upsample=True, key=km2)
    y_up = jax.block_until_ready(conv_up(x))
    ref_up = _reference_conv(conv_up, x)
    assert y_up.shape == (2, 8, 32, 32), y_up.shape
    assert jnp.allclose(y_up, ref_up, atol=1e-4, rtol=1e-4)

    print("KERNEL_OK")
</pallas_src>

<mosaic_0001>
module attributes {stable_mosaic.version = 11 : i64} {
  func.func @kernel(%arg0: i32, %arg1: i32, %arg2: memref<1x36x9x4xf32, #tpu.memory_space<vmem>>, %arg3: memref<9x4x128xf32, #tpu.memory_space<vmem>>, %arg4: memref<1x128xf32, #tpu.memory_space<vmem>>, %arg5: memref<1x1x64x128xf32, #tpu.memory_space<vmem>>) attributes {dimension_semantics = [#tpu.dimension_semantics<parallel>, #tpu.dimension_semantics<parallel>], iteration_bounds = array<i64: 2, 1>, scalar_prefetch = 0 : i64, scratch_operands = 0 : i64, tpu.core_type = #tpu.core_type<tc>, window_params = [{transform_indices = @transform_0, window_bounds = array<i64: 1, 36, 9, 4>}, {pipeline_mode = #tpu.pipeline_mode<synchronous>, transform_indices = @transform_1, window_bounds = array<i64: 9, 4, 128>}, {pipeline_mode = #tpu.pipeline_mode<synchronous>, transform_indices = @transform_2, window_bounds = array<i64: 1, 128>}, {transform_indices = @transform_3, window_bounds = array<i64: 1, 1, 64, 128>}]} {
    %c8_i32 = arith.constant 8 : i32
    %0 = arith.muli %arg1, %c8_i32 : i32
    %c0 = arith.constant 0 : index
    %c0_0 = arith.constant 0 : index
    %1 = vector.load %arg4[%c0, %c0_0] : memref<1x128xf32, #tpu.memory_space<vmem>>, vector<1x128xf32>
    %2 = vector.shape_cast %1 : vector<1x128xf32> to vector<1x128xf32>
    %3 = vector.broadcast %2 : vector<1x128xf32> to vector<64x128xf32>
    %c0_i32 = arith.constant 0 : i32
    %4 = arith.addi %0, %c0_i32 : i32
    %c0_1 = arith.constant 0 : index
    %5 = arith.index_cast %4 : i32 to index
    %c0_2 = arith.constant 0 : index
    %c0_3 = arith.constant 0 : index
    %6 = vector.load %arg2[%c0_1, %5, %c0_2, %c0_3] : memref<1x36x9x4xf32, #tpu.memory_space<vmem>>, vector<1x8x8x4xf32>
    %7 = vector.shape_cast %6 : vector<1x8x8x4xf32> to vector<8x8x4xf32>
    %8 = vector.shape_cast %7 : vector<8x8x4xf32> to vector<64x4xf32>
    %c0_4 = arith.constant 0 : index
    %c0_5 = arith.constant 0 : index
    %c0_6 = arith.constant 0 : index
    %9 = vector.load %arg3[%c0_4, %c0_5, %c0_6] : memref<9x4x128xf32, #tpu.memory_space<vmem>>, vector<1x4x128xf32>
    %10 = vector.shape_cast %9 : vector<1x4x128xf32> to vector<4x128xf32>
    %cst = arith.constant dense<0.000000e+00> : vector<64x128xf32>
    %11 = tpu.matmul %8, %10, %cst {dimension_numbers = #tpu.dot_dimension_numbers<[1], [0], [0], [1], [0, 0, 1, 1], [], []>} : vector<64x4xf32>, vector<4x128xf32>, vector<64x128xf32> -> vector<64x128xf32>
    %12 = arith.addf %3, %11 : vector<64x128xf32>
    %c9_i32 = arith.constant 9 : i32
    %13 = arith.addi %0, %c9_i32 : i32
    %c0_7 = arith.constant 0 : index
    %14 = arith.index_cast %13 : i32 to index
    %c0_8 = arith.constant 0 : index
    %c0_9 = arith.constant 0 : index
    %15 = vector.load %arg2[%c0_7, %14, %c0_8, %c0_9] : memref<1x36x9x4xf32, #tpu.memory_space<vmem>>, vector<1x8x8x4xf32>
    %16 = vector.shape_cast %15 : vector<1x8x8x4xf32> to vector<8x8x4xf32>
    %17 = vector.shape_cast %16 : vector<8x8x4xf32> to vector<64x4xf32>
    %c1 = arith.constant 1 : index
    %c0_10 = arith.constant 0 : index
    %c0_11 = arith.constant 0 : index
    %18 = vector.load %arg3[%c1, %c0_10, %c0_11] : memref<9x4x128xf32, #tpu.memory_space<vmem>>, vector<1x4x128xf32>
    %19 = vector.shape_cast %18 : vector<1x4x128xf32> to vector<4x128xf32>
    %cst_12 = arith.constant dense<0.000000e+00> : vector<64x128xf32>
    %20 = tpu.matmul %17, %19, %cst_12 {dimension_numbers = #tpu.dot_dimension_numbers<[1], [0], [0], [1], [0, 0, 1, 1], [], []>} : vector<64x4xf32>, vector<4x128xf32>, vector<64x128xf32> -> vector<64x128xf32>
    %21 = arith.addf %12, %20 : vector<64x128xf32>
    %c0_i32_13 = arith.constant 0 : i32
    %22 = arith.addi %0, %c0_i32_13 : i32
    %c0_14 = arith.constant 0 : index
    %23 = arith.index_cast %22 : i32 to index
    %c1_15 = arith.constant 1 : index
    %c0_16 = arith.constant 0 : index
    %24 = vector.load %arg2[%c0_14, %23, %c1_15, %c0_16] : memref<1x36x9x4xf32, #tpu.memory_space<vmem>>, vector<1x8x8x4xf32>
    %25 = vector.shape_cast %24 : vector<1x8x8x4xf32> to vector<8x8x4xf32>
    %26 = vector.shape_cast %25 : vector<8x8x4xf32> to vector<64x4xf32>
    %c2 = arith.constant 2 : index
    %c0_17 = arith.constant 0 : index
    %c0_18 = arith.constant 0 : index
    %27 = vector.load %arg3[%c2, %c0_17, %c0_18] : memref<9x4x128xf32, #tpu.memory_space<vmem>>, vector<1x4x128xf32>
    %28 = vector.shape_cast %27 : vector<1x4x128xf32> to vector<4x128xf32>
    %cst_19 = arith.constant dense<0.000000e+00> : vector<64x128xf32>
    %29 = tpu.matmul %26, %28, %cst_19 {dimension_numbers = #tpu.dot_dimension_numbers<[1], [0], [0], [1], [0, 0, 1, 1], [], []>} : vector<64x4xf32>, vector<4x128xf32>, vector<64x128xf32> -> vector<64x128xf32>
    %30 = arith.addf %21, %29 : vector<64x128xf32>
    %c18_i32 = arith.constant 18 : i32
    %31 = arith.addi %0, %c18_i32 : i32
    %c0_20 = arith.constant 0 : index
    %32 = arith.index_cast %31 : i32 to index
    %c0_21 = arith.constant 0 : index
    %c0_22 = arith.constant 0 : index
    %33 = vector.load %arg2[%c0_20, %32, %c0_21, %c0_22] : memref<1x36x9x4xf32, #tpu.memory_space<vmem>>, vector<1x8x8x4xf32>
    %34 = vector.shape_cast %33 : vector<1x8x8x4xf32> to vector<8x8x4xf32>
    %35 = vector.shape_cast %34 : vector<8x8x4xf32> to vector<64x4xf32>
    %c3 = arith.constant 3 : index
    %c0_23 = arith.constant 0 : index
    %c0_24 = arith.constant 0 : index
    %36 = vector.load %arg3[%c3, %c0_23, %c0_24] : memref<9x4x128xf32, #tpu.memory_space<vmem>>, vector<1x4x128xf32>
    %37 = vector.shape_cast %36 : vector<1x4x128xf32> to vector<4x128xf32>
    %cst_25 = arith.constant dense<0.000000e+00> : vector<64x128xf32>
    %38 = tpu.matmul %35, %37, %cst_25 {dimension_numbers = #tpu.dot_dimension_numbers<[1], [0], [0], [1], [0, 0, 1, 1], [], []>} : vector<64x4xf32>, vector<4x128xf32>, vector<64x128xf32> -> vector<64x128xf32>
    %39 = arith.addf %30, %38 : vector<64x128xf32>
    %c27_i32 = arith.constant 27 : i32
    %40 = arith.addi %0, %c27_i32 : i32
    %c0_26 = arith.constant 0 : index
    %41 = arith.index_cast %40 : i32 to index
    %c0_27 = arith.constant 0 : index
    %c0_28 = arith.constant 0 : index
    %42 = vector.load %arg2[%c0_26, %41, %c0_27, %c0_28] : memref<1x36x9x4xf32, #tpu.memory_space<vmem>>, vector<1x8x8x4xf32>
    %43 = vector.shape_cast %42 : vector<1x8x8x4xf32> to vector<8x8x4xf32>
    %44 = vector.shape_cast %43 : vector<8x8x4xf32> to vector<64x4xf32>
    %c4 = arith.constant 4 : index
    %c0_29 = arith.constant 0 : index
    %c0_30 = arith.constant 0 : index
    %45 = vector.load %arg3[%c4, %c0_29, %c0_30] : memref<9x4x128xf32, #tpu.memory_space<vmem>>, vector<1x4x128xf32>
    %46 = vector.shape_cast %45 : vector<1x4x128xf32> to vector<4x128xf32>
    %cst_31 = arith.constant dense<0.000000e+00> : vector<64x128xf32>
    %47 = tpu.matmul %44, %46, %cst_31 {dimension_numbers = #tpu.dot_dimension_numbers<[1], [0], [0], [1], [0, 0, 1, 1], [], []>} : vector<64x4xf32>, vector<4x128xf32>, vector<64x128xf32> -> vector<64x128xf32>
    %48 = arith.addf %39, %47 : vector<64x128xf32>
    %c18_i32_32 = arith.constant 18 : i32
    %49 = arith.addi %0, %c18_i32_32 : i32
    %c0_33 = arith.constant 0 : index
    %50 = arith.index_cast %49 : i32 to index
    %c1_34 = arith.constant 1 : index
    %c0_35 = arith.constant 0 : index
    %51 = vector.load %arg2[%c0_33, %50, %c1_34, %c0_35] : memref<1x36x9x4xf32, #tpu.memory_space<vmem>>, vector<1x8x8x4xf32>
    %52 = vector.shape_cast %51 : vector<1x8x8x4xf32> to vector<8x8x4xf32>
    %53 = vector.shape_cast %52 : vector<8x8x4xf32> to vector<64x4xf32>
    %c5 = arith.constant 5 : index
    %c0_36 = arith.constant 0 : index
    %c0_37 = arith.constant 0 : index
    %54 = vector.load %arg3[%c5, %c0_36, %c0_37] : memref<9x4x128xf32, #tpu.memory_space<vmem>>, vector<1x4x128xf32>
    %55 = vector.shape_cast %54 : vector<1x4x128xf32> to vector<4x128xf32>
    %cst_38 = arith.constant dense<0.000000e+00> : vector<64x128xf32>
    %56 = tpu.matmul %53, %55, %cst_38 {dimension_numbers = #tpu.dot_dimension_numbers<[1], [0], [0], [1], [0, 0, 1, 1], [], []>} : vector<64x4xf32>, vector<4x128xf32>, vector<64x128xf32> -> vector<64x128xf32>
    %57 = arith.addf %48, %56 : vector<64x128xf32>
    %c1_i32 = arith.constant 1 : i32
    %58 = arith.addi %0, %c1_i32 : i32
    %c0_39 = arith.constant 0 : index
    %59 = arith.index_cast %58 : i32 to index
    %c0_40 = arith.constant 0 : index
    %c0_41 = arith.constant 0 : index
    %60 = vector.load %arg2[%c0_39, %59, %c0_40, %c0_41] : memref<1x36x9x4xf32, #tpu.memory_space<vmem>>, vector<1x8x8x4xf32>
    %61 = vector.shape_cast %60 : vector<1x8x8x4xf32> to vector<8x8x4xf32>
    %62 = vector.shape_cast %61 : vector<8x8x4xf32> to vector<64x4xf32>
    %c6 = arith.constant 6 : index
    %c0_42 = arith.constant 0 : index
    %c0_43 = arith.constant 0 : index
    %63 = vector.load %arg3[%c6, %c0_42, %c0_43] : memref<9x4x128xf32, #tpu.memory_space<vmem>>, vector<1x4x128xf32>
    %64 = vector.shape_cast %63 : vector<1x4x128xf32> to vector<4x128xf32>
    %cst_44 = arith.constant dense<0.000000e+00> : vector<64x128xf32>
    %65 = tpu.matmul %62, %64, %cst_44 {dimension_numbers = #tpu.dot_dimension_numbers<[1], [0], [0], [1], [0, 0, 1, 1], [], []>} : vector<64x4xf32>, vector<4x128xf32>, vector<64x128xf32> -> vector<64x128xf32>
    %66 = arith.addf %57, %65 : vector<64x128xf32>
    %c10_i32 = arith.constant 10 : i32
    %67 = arith.addi %0, %c10_i32 : i32
    %c0_45 = arith.constant 0 : index
    %68 = arith.index_cast %67 : i32 to index
    %c0_46 = arith.constant 0 : index
    %c0_47 = arith.constant 0 : index
    %69 = vector.load %arg2[%c0_45, %68, %c0_46, %c0_47] : memref<1x36x9x4xf32, #tpu.memory_space<vmem>>, vector<1x8x8x4xf32>
    %70 = vector.shape_cast %69 : vector<1x8x8x4xf32> to vector<8x8x4xf32>
    %71 = vector.shape_cast %70 : vector<8x8x4xf32> to vector<64x4xf32>
    %c7 = arith.constant 7 : index
    %c0_48 = arith.constant 0 : index
    %c0_49 = arith.constant 0 : index
    %72 = vector.load %arg3[%c7, %c0_48, %c0_49] : memref<9x4x128xf32, #tpu.memory_space<vmem>>, vector<1x4x128xf32>
    %73 = vector.shape_cast %72 : vector<1x4x128xf32> to vector<4x128xf32>
    %cst_50 = arith.constant dense<0.000000e+00> : vector<64x128xf32>
    %74 = tpu.matmul %71, %73, %cst_50 {dimension_numbers = #tpu.dot_dimension_numbers<[1], [0], [0], [1], [0, 0, 1, 1], [], []>} : vector<64x4xf32>, vector<4x128xf32>, vector<64x128xf32> -> vector<64x128xf32>
    %75 = arith.addf %66, %74 : vector<64x128xf32>
    %c1_i32_51 = arith.constant 1 : i32
    %76 = arith.addi %0, %c1_i32_51 : i32
    %c0_52 = arith.constant 0 : index
    %77 = arith.index_cast %76 : i32 to index
    %c1_53 = arith.constant 1 : index
    %c0_54 = arith.constant 0 : index
    %78 = vector.load %arg2[%c0_52, %77, %c1_53, %c0_54] : memref<1x36x9x4xf32, #tpu.memory_space<vmem>>, vector<1x8x8x4xf32>
    %79 = vector.shape_cast %78 : vector<1x8x8x4xf32> to vector<8x8x4xf32>
    %80 = vector.shape_cast %79 : vector<8x8x4xf32> to vector<64x4xf32>
    %c8 = arith.constant 8 : index
    %c0_55 = arith.constant 0 : index
    %c0_56 = arith.constant 0 : index
    %81 = vector.load %arg3[%c8, %c0_55, %c0_56] : memref<9x4x128xf32, #tpu.memory_space<vmem>>, vector<1x4x128xf32>
    %82 = vector.shape_cast %81 : vector<1x4x128xf32> to vector<4x128xf32>
    %cst_57 = arith.constant dense<0.000000e+00> : vector<64x128xf32>
    %83 = tpu.matmul %80, %82, %cst_57 {dimension_numbers = #tpu.dot_dimension_numbers<[1], [0], [0], [1], [0, 0, 1, 1], [], []>} : vector<64x4xf32>, vector<4x128xf32>, vector<64x128xf32> -> vector<64x128xf32>
    %84 = arith.addf %75, %83 : vector<64x128xf32>
    %c0_58 = arith.constant 0 : index
    %c0_59 = arith.constant 0 : index
    %c0_60 = arith.constant 0 : index
    %c0_61 = arith.constant 0 : index
    %85 = vector.load %arg5[%c0_58, %c0_59, %c0_60, %c0_61] : memref<1x1x64x128xf32, #tpu.memory_space<vmem>>, vector<1x1x64x128xf32>
    %86 = vector.shape_cast %85 : vector<1x1x64x128xf32> to vector<64x128xf32>
    %87 = vector.shape_cast %84 : vector<64x128xf32> to vector<1x1x64x128xf32>
    tpu.vector_store %arg5[%c0_58, %c0_59, %c0_60, %c0_61], %87 {strides = array<i32>} : memref<1x1x64x128xf32, #tpu.memory_space<vmem>>, vector<1x1x64x128xf32>,
    return
  }
  func.func @transform_0(%arg0: i32, %arg1: i32) -> (i32, i32, i32, i32) {
    %c0_i32 = arith.constant 0 : i32
    %c0_i32_0 = arith.constant 0 : i32
    %c0_i32_1 = arith.constant 0 : i32
    %c0_i32_2 = arith.constant 0 : i32
    return %arg0, %c0_i32, %c0_i32_0, %c0_i32_1 : i32, i32, i32, i32
  }
  func.func @transform_1(%arg0: i32, %arg1: i32) -> (i32, i32, i32) {
    %c0_i32 = arith.constant 0 : i32
    %c0_i32_0 = arith.constant 0 : i32
    %c0_i32_1 = arith.constant 0 : i32
    %c0_i32_2 = arith.constant 0 : i32
    return %c0_i32, %c0_i32_0, %c0_i32_1 : i32, i32, i32
  }
  func.func @transform_2(%arg0: i32, %arg1: i32) -> (i32, i32) {
    %c0_i32 = arith.constant 0 : i32
    %c0_i32_0 = arith.constant 0 : i32
    %c0_i32_1 = arith.constant 0 : i32
    return %c0_i32, %c0_i32_0 : i32, i32
  }
  func.func @transform_3(%arg0: i32, %arg1: i32) -> (i32, i32, i32, i32) {
    %c0_i32 = arith.constant 0 : i32
    %c0_i32_0 = arith.constant 0 : i32
    %c0_i32_1 = arith.constant 0 : i32
    return %arg0, %arg1, %c0_i32, %c0_i32_0 : i32, i32, i32, i32
  }
}

</mosaic_0001>

<bundles_post_ra>
// kernel: tpu_custom_call.1
= control target key start
LH: loop header
LB: loop body
LE: loop exit
PB: predicated region body
PF: predicated region fallthrough
CT: control target
= control target key end

     0   :  { %8 = vsyncpa [#allocation3], 0  ;;  %s2590_s0 = inlined_call_operand.vmem [shape: f32[2,36,9,4], index: 0, kind: input, shape index: {}]   ;;  %s2591_s1 = inlined_call_operand.vmem [shape: f32[9,4,128], index: 1, kind: input, shape index: {}]   ;;  %s2592_s2 = inlined_call_operand.vmem [shape: f32[1,128], index: 2, kind: input, shape index: {}]   ;;  %s2593_s3 = inlined_call_operand.hbm [shape: f32[2,1,64,128], index: 3, kind: output, shape index: {}]  }
   0x1   :  { %10 = vsyncpa [#allocation3 + $0x1], 0  ;;  %s2279_s12 = smov 0   ;;  %s2281_s13 = smov 0  }
   0x2   :  { %s2283_s14 = smov 0   ;;  %s2285_s15 = smov 0  }
   0x3   :  { %s2287_s16 = smov 0   ;;  %s2289_s17 = smov 0  }
   0x4 LB: > { %s1678_s18 = sadd.s32 4294967295, %s2254_s17   ;;  %s1679_s19 = sadd.s32 4294967294, %s2254_s17   ;;  %s2254_s17 = sphi %s2289_s17, %s16_s17   ;;  %s2250_s16 = sphi %s2287_s16, %s2600_s16   ;;  %s2246_s15 = sphi %s2285_s15, %s2599_s15   ;;  %s2242_s14 = sphi %s2283_s14, %s2598_s14   ;;  %s2238_s13 = sphi %s2281_s13, %s2597_s13   ;;  %s2234_s12 = sphi %s2279_s12, %s2596_s12  }
   0x5   : > { %s28_s20 = sadd.s32 1, %s2250_s16  ;;  %s105_s21 = sadd.s32 1, %s2242_s14 }
   0x6   : > { %p30_p0 = scmp.ge.s32.totalorder %s28_s20, 2  ;;  %p115_p1 = scmp.ne.s32.totalorder %s2242_s14, %s2238_s13 }
   0x7   : > { %p116_p2 = scmp.eq.s32.totalorder %s1678_s18, 1  ;;  %p121_p3 = scmp.ne.s32.totalorder %s2238_s13, %s2234_s12 }
   0x8   : > { %s2602_s20 = smov (%p30_p0, %s28_s20), 0  ;;  %p122_p5 = scmp.eq.s32.totalorder %s1679_s19, 1 }
   0x9   : > { %p2319_p4 = por %p116_p2, %p115_p1  ;;  %s100_s23 = ssub.s32 %s2250_s16, %s2602_s20 }
   0xa   : > { %p1682_p6 = scmp.ge.s32.totalorder %s2254_s17, 1  ;;  %p103_p7 = scmp.eq.s32.totalorder %s100_s23, 0 }
   0xb   : > { %p2326_p8 = por %p122_p5, %p121_p3  ;;  %p154_p9 = scmp.lt.s32.totalorder %s2254_s17, 3 }
   0xc   : > { %s2332_s25 = scalar_select %p103_p7, %s2242_s14, %s105_s21  }
   0xd   : > { %p155_p10 = pnand %p1682_p6, %p154_p9 }
   0xe   : > { %v201_v0 = vld [vmem:[%s2591_s1] sm:$0xf] (!%p155_p10)  ;;  %vm227_vm0 = vcmask (!%p155_p10), 1043456   ;;  %v2340_v1 = vld [vmem:[%s2591_s1 + $0x10] sm:$0xf] (!%p155_p10)  ;;  %p178_p11 = scmp.lt.s32.totalorder (!%p155_p10), %s2246_s15, 1 }
   0xf   : > { %158 = sbr.rel (%p155_p10) target bundleno = 329 (0x149), region = 32  ;;  %1918 = vmatprep.subr.msk.mxu1 (!%p155_p10), %vm227_vm0, %v201_v0  ;;  %1974 = vmatprep.subr.msk.mxu0 (!%p155_p10), %vm227_vm0, %v2340_v1  ;;  %v1703_v2 = vld [vmem:[%s2591_s1 + $0x4] sm:$0xf] (!%p155_p10)  ;;  %v1767_v3 = vld [vmem:[%s2591_s1 + $0x14] sm:$0xf] (!%p155_p10)  ;;  %vm202_vm1 = vcmask (!%p155_p10), 31744  }
  0x10   : > { %1919 = vmatpush3.msk.msra.mxu1 (!%p155_p10), %vm227_vm0, %v201_v0  ;;  %1975 = vmatpush3.msk.msra.mxu0 (!%p155_p10), %vm227_vm0, %v2340_v1  ;;  %v1785_v10 = vld [vmem:[%s2591_s1 + $0x18] sm:$0xf] (!%p155_p10)  ;;  %v1713_v11 = vld [vmem:[%s2591_s1 + $0x8] sm:$0xf] (!%p155_p10)  ;;  %v1803_v20 = vld [vmem:[%s2591_s1 + $0x1c] sm:$0xf] (!%p155_p10) }
  0x11   : > { %1932 = vmatprep.subr.msk.mxu1 (!%p155_p10), %vm227_vm0, %v1703_v2  ;;  %1988 = vmatprep.subr.msk.mxu0 (!%p155_p10), %vm227_vm0, %v1767_v3  ;;  %v1731_v29 = vld [vmem:[%s2591_s1 + $0xc] sm:$0xf] (!%p155_p10)  ;;  %v1821_v35 = vld [vmem:[%s2591_s1 + $0x20] sm:$0xf] (!%p155_p10)  ;;  %s175_s5 = sand.u32 (!%p155_p10), 1, %s2238_s13   ;;  %s1836_s10 = sshll.u32 (!%p155_p10), %s2246_s15, 10 }
  0x12   : > { %v1685_v62 = vld [vmem:[%s2592_s2] ss:$0 sm:$0xff] (!%p155_p10)  ;;  %s2536_s21 = scalar_lea.hbm (!%p155_p10), %s2593_s3, %s1836_s10  ;;  %s2256_s26 = smov (!%p155_p10), [#allocation2]  }
  0x13   : > { %s2180_s27 = sshll.u32 (!%p155_p10), %s2256_s26, 4  ;;  %s2181_s27 = int_to_ptr.vmem [resolvable:$false] %s2180_s27 }
  0x14   : > { %s2182_s28 = scalar_lea.vmem (!%p155_p10), %s2181_s27, 2048 }
  0x16   : > { %s179_s7 = scalar_select %p178_p11, %s2246_s15, 1 }
  0x17   : > { %s2544_s15 = scalar_lea.sflag [#allocation3], %s175_s5 }
  0x18   : > { %s2118_s8 = smul.u32 576, %s179_s7 }
  0x1a   : > { %s2361_s11 = scalar_lea.vmem %s2590_s0, %s2118_s8  ;;  %s1683_s8 = sshll.u32 %s175_s5, 6 }
  0x1b   : > { %v193_v4 = vld [vmem:[%s2361_s11] sm:$0xff]  ;;  %v1741_v5 = vld [vmem:[%s2361_s11 + $0x1b0] sm:$0xff]  ;;  %s2523_s9 = scalar_lea.vmem [#allocation2], %s1683_s8 }
  0x1c   : > { %v194_v6 = vld [vmem:[%s2361_s11 + $0x10] sm:$0xff]  ;;  %1920 = vmatprep.mubr.msk.f32.mxu1 %vm202_vm1, %v193_v4  ;;  %1976 = vmatprep.mubr.msk.f32.mxu0 %vm202_vm1, %v1741_v5  ;;  %v1742_v7 = vld [vmem:[%s2361_s11 + $0x1c0] sm:$0xff] }
  0x1d   : > { %v195_v8 = vld [vmem:[%s2361_s11 + $0x20] sm:$0xff]  ;;  %v1743_v9 = vld [vmem:[%s2361_s11 + $0x1d0] sm:$0xff]  ;;  %1921 = vmatmul.mubr.msk.f32.vlgmr.msra.gmra.mrb[0].mxu1 %vm202_vm1, %v194_v6  ;;  %1977 = vmatmul.mubr.msk.f32.vlgmr.msra.gmra.mrb[0].mxu0 %vm202_vm1, %v1742_v7 }
  0x1e   : > { %1933 = vmatpush3.msk.msra.mxu1 %vm227_vm0, %v1703_v2  ;;  %1989 = vmatpush3.msk.msra.mxu0 %vm227_vm0, %v1767_v3  ;;  %v196_v12 = vld [vmem:[%s2361_s11 + $0x30] sm:$0xff]  ;;  %v1744_v13 = vld [vmem:[%s2361_s11 + $0x1e0] sm:$0xff] }
  0x1f   : > { %1923 = vmatprep.mubr.msk.f32.mxu1 %vm202_vm1, %v195_v8  ;;  %1979 = vmatprep.mubr.msk.f32.mxu0 %vm202_vm1, %v1743_v9  ;;  %v197_v14 = vld [vmem:[%s2361_s11 + $0x40] sm:$0xff]  ;;  %v198_v16 = vld [vmem:[%s2361_s11 + $0x50] sm:$0xff] }
  0x20   : > { %v1759_v15 = vld [vmem:[%s2361_s11 + $0x121] sm:$0xff]  ;;  %2002 = vmatprep.subr.msk.mxu0 %vm227_vm0, %v1785_v10  ;;  %1946 = vmatprep.subr.msk.mxu1 %vm227_vm0, %v1713_v11  ;;  %v1760_v17 = vld [vmem:[%s2361_s11 + $0x131] sm:$0xff] }
  0x21   : > { %1924 = vmatmul.mubr.msk.f32.gmra.mrb[2].mxu1 %vm202_vm1, %v196_v12  ;;  %1980 = vmatmul.mubr.msk.f32.gmra.mrb[2].mxu0 %vm202_vm1, %v1744_v13  ;;  %v199_v18 = vld [vmem:[%s2361_s11 + $0x60] sm:$0xff]  ;;  %v200_v21 = vld [vmem:[%s2361_s11 + $0x70] sm:$0xff] }
  0x22   : > { %1926 = vmatprep.mubr.msk.f32.mxu1 %vm202_vm1, %v197_v14  ;;  %1990 = vmatprep.mubr.msk.f32.mxu0 %vm202_vm1, %v1759_v15  ;;  %v1761_v19 = vld [vmem:[%s2361_s11 + $0x141] sm:$0xff]  ;;  %v1762_v22 = vld [vmem:[%s2361_s11 + $0x151] sm:$0xff] }
  0x23   : > { %v1695_v23 = vld [vmem:[%s2361_s11 + $0x90] sm:$0xff]  ;;  %v1763_v24 = vld [vmem:[%s2361_s11 + $0x161] sm:$0xff] }
  0x24   : > { %v1696_v25 = vld [vmem:[%s2361_s11 + $0xa0] sm:$0xff]  ;;  %v1764_v26 = vld [vmem:[%s2361_s11 + $0x171] sm:$0xff] }
  0x25   : > { %1927 = vmatmul.mubr.msk.f32.gmra.mrb[4].mxu1 %vm202_vm1, %v198_v16  ;;  %1991 = vmatmul.mubr.msk.f32.vlgmr.msra.gmra.mrb[0].mxu0 %vm202_vm1, %v1760_v17  ;;  %v1697_v27 = vld [vmem:[%s2361_s11 + $0xb0] sm:$0xff]  ;;  %v1765_v28 = vld [vmem:[%s2361_s11 + $0x181] sm:$0xff] }
  0x26   : > { %2003 = vmatpush3.msk.msra.mxu0 %vm227_vm0, %v1785_v10  ;;  %1929 = vmatprep.mubr.msk.f32.mxu1 %vm202_vm1, %v199_v18  ;;  %v1698_v30 = vld [vmem:[%s2361_s11 + $0xc0] sm:$0xff]  ;;  %v1766_v31 = vld [vmem:[%s2361_s11 + $0x191] sm:$0xff] }
  0x27   : > { %1993 = vmatprep.mubr.msk.f32.mxu0 %vm202_vm1, %v1761_v19  ;;  %2016 = vmatprep.subr.msk.mxu0 %vm227_vm0, %v1803_v20  ;;  %v1699_v32 = vld [vmem:[%s2361_s11 + $0xd0] sm:$0xff]  ;;  %v1700_v33 = vld [vmem:[%s2361_s11 + $0xe0] sm:$0xff] }
  0x28   : > { %v1701_v34 = vld [vmem:[%s2361_s11 + $0xf0] sm:$0xff]  ;;  %v1702_v36 = vld [vmem:[%s2361_s11 + $0x100] sm:$0xff] }
  0x29   : > { %1930 = vmatmul.mubr.msk.f32.gmra.mrb[6].mxu1 %vm202_vm1, %v200_v21  ;;  %1994 = vmatmul.mubr.msk.f32.gmra.mrb[2].mxu0 %vm202_vm1, %v1762_v22  ;;  %v497_v37 = vld [vmem:[%s2361_s11 + $0x1] sm:$0xff]  ;;  %v498_v38 = vld [vmem:[%s2361_s11 + $0x11] sm:$0xff] }
  0x2a   : > { %1934 = vmatprep.mubr.msk.f32.mxu1 %vm202_vm1, %v1695_v23  ;;  %1996 = vmatprep.mubr.msk.f32.mxu0 %vm202_vm1, %v1763_v24  ;;  %v499_v39 = vld [vmem:[%s2361_s11 + $0x21] sm:$0xff]  ;;  %v500_v40 = vld [vmem:[%s2361_s11 + $0x31] sm:$0xff] }
  0x2b   : > { %v1784_v41 = vld [vmem:[%s2361_s11 + $0x80] sm:$0xff]  ;;  %v502_v43 = vld [vmem:[%s2361_s11 + $0x51] sm:$0xff] }
  0x2c   : > { %v501_v42 = vld [vmem:[%s2361_s11 + $0x41] sm:$0xff]  ;;  %v504_v45 = vld [vmem:[%s2361_s11 + $0x71] sm:$0xff] }
  0x2d   : > { %1935 = vmatmul.mubr.msk.f32.vlgmr.msra.gmra.mrb[0].mxu1 %vm202_vm1, %v1696_v25  ;;  %1997 = vmatmul.mubr.msk.f32.gmra.mrb[4].mxu0 %vm202_vm1, %v1764_v26  ;;  %v503_v44 = vld [vmem:[%s2361_s11 + $0x61] sm:$0xff]  ;;  %v1724_v47 = vld [vmem:[%s2361_s11 + $0x130] sm:$0xff] }
  0x2e   : > { %1947 = vmatpush3.msk.msra.mxu1 %vm227_vm0, %v1713_v11  ;;  %1937 = vmatprep.mubr.msk.f32.mxu1 %vm202_vm1, %v1697_v27  ;;  %v1723_v46 = vld [vmem:[%s2361_s11 + $0x120] sm:$0xff]  ;;  %v1726_v49 = vld [vmem:[%s2361_s11 + $0x150] sm:$0xff] }
  0x2f   : > { %1999 = vmatprep.mubr.msk.f32.mxu0 %vm202_vm1, %v1765_v28  ;;  %1960 = vmatprep.subr.msk.mxu1 %vm227_vm0, %v1731_v29  ;;  %v1725_v48 = vld [vmem:[%s2361_s11 + $0x140] sm:$0xff]  ;;  %v1802_v50 = vld [vmem:[%s2361_s11 + $0x110] sm:$0xff] }
  0x30   : > { %v1727_v51 = vld [vmem:[%s2361_s11 + $0x160] sm:$0xff]  ;;  %v1728_v52 = vld [vmem:[%s2361_s11 + $0x170] sm:$0xff] }
  0x31   : > { %1938 = vmatmul.mubr.msk.f32.gmra.mrb[2].mxu1 %vm202_vm1, %v1698_v30  ;;  %2000 = vmatmul.mubr.msk.f32.gmra.mrb[6].mxu0 %vm202_vm1, %v1766_v31  ;;  %v1729_v53 = vld [vmem:[%s2361_s11 + $0x180] sm:$0xff]  ;;  %v1730_v54 = vld [vmem:[%s2361_s11 + $0x190] sm:$0xff] }
  0x32   : > { %1940 = vmatprep.mubr.msk.f32.mxu1 %vm202_vm1, %v1699_v32  ;;  %2004 = vmatprep.mubr.msk.f32.mxu0 %vm202_vm1, %v194_v6  ;;  %v1745_v55 = vld [vmem:[%s2361_s11 + $0x1f0] sm:$0xff]  ;;  %v1746_v56 = vld [vmem:[%s2361_s11 + $0x200] sm:$0xff] }
  0x33   : > { %v1747_v57 = vld [vmem:[%s2361_s11 + $0x210] sm:$0xff]  ;;  %v1748_v58 = vld [vmem:[%s2361_s11 + $0x220] sm:$0xff] }
  0x34   : > { %v1820_v59 = vld [vmem:[%s2361_s11 + $0x81] sm:$0xff]  ;;  %s1583_s11 = sshll.u32 %s2523_s9, 4  ;;  %s2538_s11 = int_to_ptr.vmem [resolvable:$true] %s1583_s11 }
  0x35   : > { %1941 = vmatmul.mubr.msk.f32.gmra.mrb[4].mxu1 %vm202_vm1, %v1700_v33  ;;  %2005 = vmatmul.mubr.msk.f32.vlgmr.msra.gmra.mrb[0].mxu0 %vm202_vm1, %v195_v8  ;;  %s2176_s23 = scalar_lea.vmem %s2538_s11, 1024  ;;  %p2183_p1 = scmp.lt.s32.totalorder %s2538_s11, %s2181_s27 }
  0x36   : > { %2017 = vmatpush3.msk.msra.mxu0 %vm227_vm0, %v1803_v20  ;;  %1943 = vmatprep.mubr.msk.f32.mxu1 %vm202_vm1, %v1701_v34  ;;  %p2177_p12 = scmp.ne.s32.totalorder %s2538_s11, %s2176_s23  ;;  %p2184_p2 = scmp.lt.s32.totalorder %s2182_s28, %s2176_s23 }
  0x37   : > { %2007 = vmatprep.mubr.msk.f32.mxu0 %vm202_vm1, %v196_v12  ;;  %2030 = vmatprep.subr.msk.mxu0 %vm227_vm0, %v1821_v35 }
  0x38   : > { %p2178_p13 = pnand %p2177_p12, %p2319_p4  ;;  %p2185_p3 = por %p2184_p2, %p2183_p1 }
  0x39   : > { %1944 = vmatmul.mubr.msk.f32.gmra.mrb[6].mxu1 %vm202_vm1, %v1702_v36  ;;  %2008 = vmatmul.mubr.msk.f32.gmra.mrb[2].mxu0 %vm202_vm1, %v197_v14 }
  0x3a   : > { %1948 = vmatprep.mubr.msk.f32.mxu1 %vm202_vm1, %v497_v37  ;;  %2010 = vmatprep.mubr.msk.f32.mxu0 %vm202_vm1, %v198_v16  ;;  %p2179_p0 = pneg %p2178_p13 }
  0x3c   : > { %p2186_p5 = pnand %p2185_p3, %p2179_p0 }
  0x3d   : > { %1949 = vmatmul.mubr.msk.f32.vlgmr.msra.gmra.mrb[0].mxu1 %vm202_vm1, %v498_v38  ;;  %2011 = vmatmul.mubr.msk.f32.gmra.mrb[4].mxu0 %vm202_vm1, %v199_v18 }
  0x3e   : > { %1961 = vmatpush3.msk.msra.mxu1 %vm227_vm0, %v1731_v29  ;;  %1951 = vmatprep.mubr.msk.f32.mxu1 %vm202_vm1, %v499_v39 }
  0x3f   : > { %2013 = vmatprep.mubr.msk.f32.mxu0 %vm202_vm1, %v200_v21  ;;  %2044 = vmatprep.subr.msk.mxu1 %vm227_vm0, %v2340_v1 }
  0x41   : > { %1952 = vmatmul.mubr.msk.f32.gmra.mrb[2].mxu1 %vm202_vm1, %v500_v40  ;;  %2014 = vmatmul.mubr.msk.f32.gmra.mrb[6].mxu0 %vm202_vm1, %v1784_v41 }
  0x42   : > { %1954 = vmatprep.mubr.msk.f32.mxu1 %vm202_vm1, %v501_v42  ;;  %2018 = vmatprep.mubr.msk.f32.mxu0 %vm202_vm1, %v1696_v25 }
  0x45   : > { %1955 = vmatmul.mubr.msk.f32.gmra.mrb[4].mxu1 %vm202_vm1, %v502_v43  ;;  %2019 = vmatmul.mubr.msk.f32.vlgmr.msra.gmra.mrb[0].mxu0 %vm202_vm1, %v1697_v27 }
  0x46   : > { %2031 = vmatpush3.msk.msra.mxu0 %vm227_vm0, %v1821_v35  ;;  %1957 = vmatprep.mubr.msk.f32.mxu1 %vm202_vm1, %v503_v44 }
  0x47   : > { %2021 = vmatprep.mubr.msk.f32.mxu0 %vm202_vm1, %v1698_v30 }
  0x49   : > { %1958 = vmatmul.mubr.msk.f32.gmra.mrb[6].mxu1 %vm202_vm1, %v504_v45  ;;  %2022 = vmatmul.mubr.msk.f32.gmra.mrb[2].mxu0 %vm202_vm1, %v1699_v32 }
  0x4a   : > { %1962 = vmatprep.mubr.msk.f32.mxu1 %vm202_vm1, %v1723_v46  ;;  %2024 = vmatprep.mubr.msk.f32.mxu0 %vm202_vm1, %v1700_v33 }
  0x4d   : > { %1963 = vmatmul.mubr.msk.f32.vlgmr.msra.gmra.mrb[0].mxu1 %vm202_vm1, %v1724_v47  ;;  %2025 = vmatmul.mubr.msk.f32.gmra.mrb[4].mxu0 %vm202_vm1, %v1701_v34 }
  0x4e   : > { %2045 = vmatpush3.msk.msra.mxu1 %vm227_vm0, %v2340_v1  ;;  %1965 = vmatprep.mubr.msk.f32.mxu1 %vm202_vm1, %v1725_v48 }
  0x4f   : > { %2027 = vmatprep.mubr.msk.f32.mxu0 %vm202_vm1, %v1702_v36 }
  0x51   : > { %1966 = vmatmul.mubr.msk.f32.gmra.mrb[2].mxu1 %vm202_vm1, %v1726_v49  ;;  %2028 = vmatmul.mubr.msk.f32.gmra.mrb[6].mxu0 %vm202_vm1, %v1802_v50 }
  0x52   : > { %1968 = vmatprep.mubr.msk.f32.mxu1 %vm202_vm1, %v1727_v51  ;;  %2032 = vmatprep.mubr.msk.f32.mxu0 %vm202_vm1, %v498_v38 }
  0x55   : > { %1969 = vmatmul.mubr.msk.f32.gmra.mrb[4].mxu1 %vm202_vm1, %v1728_v52  ;;  %2033 = vmatmul.mubr.msk.f32.vlgmr.msra.gmra.mrb[0].mxu0 %vm202_vm1, %v499_v39 }
  0x56   : > { %1971 = vmatprep.mubr.msk.f32.mxu1 %vm202_vm1, %v1729_v53  ;;  %2035 = vmatprep.mubr.msk.f32.mxu0 %vm202_vm1, %v500_v40 }
  0x59   : > { %1972 = vmatmul.mubr.msk.f32.gmra.mrb[6].mxu1 %vm202_vm1, %v1730_v54  ;;  %2036 = vmatmul.mubr.msk.f32.gmra.mrb[2].mxu0 %vm202_vm1, %v501_v42 }
  0x5a   : > { %1982 = vmatprep.mubr.msk.f32.mxu1 %vm202_vm1, %v1745_v55  ;;  %2038 = vmatprep.mubr.msk.f32.mxu0 %vm202_vm1, %v502_v43 }
  0x5d   : > { %1983 = vmatmul.mubr.msk.f32.vlgmr.msra.gmra.mrb[4].mxu1 %vm202_vm1, %v1746_v56  ;;  %2039 = vmatmul.mubr.msk.f32.gmra.mrb[4].mxu0 %vm202_vm1, %v503_v44 }
  0x5e   : > { %1985 = vmatprep.mubr.msk.f32.mxu1 %vm202_vm1, %v1747_v57  ;;  %2041 = vmatprep.mubr.msk.f32.mxu0 %vm202_vm1, %v504_v45 }
  0x61   : > { %1986 = vmatmul.mubr.msk.f32.gmra.mrb[6].mxu1 %vm202_vm1, %v1748_v58  ;;  %2042 = vmatmul.mubr.msk.f32.gmra.mrb[6].mxu0 %vm202_vm1, %v1820_v59 }
 0x120   : > { %v1964_v60 = vpop.f32.mrb[0].mxu1 }
 0x121   : > { %v753_v61 = vpop.f32.mrb[1].mxu1  ;;  %v2046_v1 = vadd.f32 %v1964_v60, %v1685_v62 }
 0x122   : > { %v2048_v2 = vadd.f32 %v1685_v62, %v753_v61 }
 0x124   : > { %v1967_v63 = vpop.f32.mrb[2].mxu1 }
 0x125   : > { %v763_v0 = vpop.f32.mrb[3].mxu1  ;;  %v2050_v7 = vadd.f32 %v1967_v63, %v1685_v62 }
 0x126   : > { %v2052_v8 = vadd.f32 %v1685_v62, %v763_v0 }
 0x128   : > { %v2034_v3 = vpop.f32.mrb[0].mxu0 }
 0x129   : > { %v2047_v4 = vadd.f32 %v2046_v1, %v2034_v3  ;;  %v1512_v5 = vpop.f32.mrb[1].mxu0 }
 0x12a   : > { %v2049_v6 = vadd.f32 %v2048_v2, %v1512_v5 }
 0x12b   : > { %1560 = vst [vmem:[%s2523_s9 + $0x8] sm:$0xff] %v2047_v4 }
 0x12c   : > { %1559 = vst [vmem:[%s2523_s9] sm:$0xff] %v2049_v6  ;;  %v2037_v9 = vpop.f32.mrb[2].mxu0 }
 0x12d   : > { %v2051_v10 = vadd.f32 %v2050_v7, %v2037_v9  ;;  %v1522_v11 = vpop.f32.mrb[3].mxu0 }
 0x12e   : > { %v2053_v12 = vadd.f32 %v2052_v8, %v1522_v11 }
 0x12f   : > { %1562 = vst [vmem:[%s2523_s9 + $0x18] sm:$0xff] %v2051_v10 }
 0x130   : > { %1561 = vst [vmem:[%s2523_s9 + $0x10] sm:$0xff] %v2053_v12  ;;  %v1984_v13 = vpop.f32.mrb[4].mxu1  ;;  %v2040_v14 = vpop.f32.mrb[4].mxu0 }
 0x131   : > { %v2054_v15 = vadd.f32 %v1984_v13, %v1685_v62  ;;  %v926_v16 = vpop.f32.mrb[5].mxu1  ;;  %v1532_v17 = vpop.f32.mrb[5].mxu0 }
 0x132   : > { %v2056_v18 = vadd.f32 %v1685_v62, %v926_v16 }
 0x133   : > { %v2055_v19 = vadd.f32 %v2054_v15, %v2040_v14 }
 0x134   : > { %v2057_v20 = vadd.f32 %v2056_v18, %v1532_v17  ;;  %v1987_v21 = vpop.f32.mrb[6].mxu1  ;;  %v2043_v22 = vpop.f32.mrb[6].mxu0 }
 0x135   : > { %1564 = vst [vmem:[%s2523_s9 + $0x28] sm:$0xff] %v2055_v19  ;;  %v2058_v23 = vadd.f32 %v1987_v21, %v1685_v62  ;;  %v936_v24 = vpop.f32.mrb[7].mxu1  ;;  %v1542_v25 = vpop.f32.mrb[7].mxu0 }
 0x136   : > { %1563 = vst [vmem:[%s2523_s9 + $0x20] sm:$0xff] %v2057_v20  ;;  %v2060_v26 = vadd.f32 %v1685_v62, %v936_v24 }
 0x137   : > { %v2059_v27 = vadd.f32 %v2058_v23, %v2043_v22 }
 0x138   : > { %v2061_v28 = vadd.f32 %v2060_v26, %v1542_v25 }
 0x139   : > { %1566 = vst [vmem:[%s2523_s9 + $0x38] sm:$0xff] %v2059_v27 }
 0x13a   : > { %1565 = vst [vmem:[%s2523_s9 + $0x30] sm:$0xff] %v2061_v28 }
 0x13b   : > { %2189 = shalt.err (!%p2186_p5)
}
 0x13c   : > { %s2190_s29 = scalar_lea.hbm %s2536_s21, 1024  ;;  %s2194_s5 = scalar_lea.hbm %s2593_s3, 2048 }
 0x13d   : > { %p2191_p6 = scmp.ne.s32.totalorder %s2536_s21, %s2190_s29  ;;  %p2195_p10 = scmp.lt.u32.totalorder %s2536_s21, %s2593_s3 }
 0x13e   : > { %p2196_p11 = scmp.lt.u32.totalorder %s2194_s5, %s2190_s29  ;;  %p2198_p13 = scmp.lt.u32.totalorder %s2190_s29, %s2536_s21 }
 0x13f   : > { %p2192_p7 = pnand %p2191_p6, %p2319_p4 }
 0x140   : > { %p2197_p12 = por %p2196_p11, %p2195_p10 }
 0x141   : > { %p2193_p9 = pneg %p2192_p7 }
 0x142   : > { %p2199_p0 = por %p2198_p13, %p2197_p12 }
 0x144   : > { %p2200_p1 = pnand %p2199_p0, %p2193_p9 }
 0x146   : > { %2203 = shalt.err (!%p2200_p1)
}
 0x147   : > { %s2257_s8 = smov 128   ;;  %s2258_s9 = smov 8  }
 0x148   : > { %2119 = dma.vmem_to_hbm [thread:$0]  (%p2319_p4), %s2538_s11, 1024, %s2536_s21, %s2544_s15, %s2257_s8, %s2257_s8, %s2258_s9  }
 0x149 PF: > { %p2125_p2 = scmp.ge.s32.totalorder %s2254_s17, 2  ;;  %s1598_s10 = sand.u32 1, %s2234_s12  }
 0x14a   : > { %s1599_s18 = scalar_lea.sflag [#allocation3], %s1598_s10 }
 0x14b   : > { %p2122_p3 = pnand %p2125_p2, %p2326_p8 }
 0x14d   : > { %2229 = dma.done.wait (!%p2122_p3), %s1599_s18, 1024  }
 0x14e   : > { %2231 = vsyncadd (!%p2122_p3), %s1599_s18, 4294966272  ;;  %s16_s17 = sadd.s32 1, %s2254_s17   ;;  %s2596_s12 = smov %s2238_s13 }
 0x14f   : > { %p13_p5 = scmp.ge.s32.totalorder %s16_s17, 4   ;;  %s2597_s13 = smov %s2242_s14 }
 0x150   : > { %s2598_s14 = smov %s2332_s25  ;;  %s2599_s15 = smov %s2250_s16 }
 0x151   : > { %s2600_s16 = smov %s2602_s20  ;;  %15 = sbr.rel (!%p13_p5) target bundleno = 4 (0x4), region = 81 }
 0x158   :  { %1604 = vsyncpa [#allocation3], 1 }
 0x159   :  { %1606 = vsyncpa [#allocation3 + $0x1], 1 }

</bundles_post_ra>
